<compile_context>
chip_gen: v5e
topology: v5e:2x2
jax: 0.10.0
libtpu: 0.0.40
codegen_flags: <defaults>
</compile_context>

<pallas_src>
import jax
import jax.numpy as jnp
from jax.experimental import pallas as pl
from jax.experimental.pallas import tpu as pltpu


def cbam_std_attn_kernel(x_ref, w1t_ref, w2t_ref, o_ref):
    # x_ref: (Bt, C, HW); w1t_ref: (C, Cr); w2t_ref: (Cr, C); o_ref: (Bt, 1, C)
    bt = x_ref.shape[0]
    hw = x_ref.shape[-1]

    x = x_ref[...].astype(jnp.float32)            # upcast once inside (bf16 stays bf16 over HBM)

    # --- One-pass spatial-global pooling over the lane (H*W) axis ---
    s = jnp.sum(x, axis=-1)                       # (Bt, C)  -> C on the lane axis from here on
    ss = jnp.sum(x * x, axis=-1)                  # (Bt, C)
    mx = jnp.max(x, axis=-1)                      # (Bt, C)  == AdaptiveMaxPool2d(1)

    mean = s * (1.0 / hw)                         # == AdaptiveAvgPool2d(1)
    # Unbiased variance (matches torch.Tensor.std, ddof=1):
    #   var = (sum(x^2) - hw*mean^2) / (hw - 1) = (ss - mean*s) / (hw - 1)
    var = (ss - mean * s) / (hw - 1)
    std = jnp.sqrt(jnp.maximum(var, 0.0))         # (Bt, C)

    # --- Shared MLP (fc1 -> ReLU -> fc2), all three branches batched in one matmul ---
    pooled = jnp.concatenate([mean, mx, std], axis=0)                   # (3*Bt, C)
    h = jnp.maximum(
        jnp.dot(pooled, w1t_ref[...].astype(jnp.float32),
                preferred_element_type=jnp.float32), 0.0)               # (3*Bt, Cr)
    out = jnp.dot(h, w2t_ref[...].astype(jnp.float32),
                  preferred_element_type=jnp.float32)                   # (3*Bt, C)

    # avg_out + max_out + std_out, then sigmoid; lane-dense store.
    summed = out[0:bt] + out[bt:2 * bt] + out[2 * bt:3 * bt]            # (Bt, C)
    o_ref[...] = jax.nn.sigmoid(summed)[:, None, :].astype(o_ref.dtype)


def _pick_batch_tile(batch, per_batch_bytes, *, vmem_budget=16 << 20,
                     dma_target=4 << 20, min_grid=2):
    """Largest divisor of `batch` whose double-buffered input tile fits the budget."""
    bt_vmem = max(1, vmem_budget // max(1, 2 * per_batch_bytes))
    bt_dma = max(1, dma_target // max(1, per_batch_bytes))
    cap = max(1, min(bt_vmem, bt_dma))
    if batch >= min_grid:
        # Keep >= min_grid grid steps so both v7x TensorCores get work.
        cap = max(1, min(cap, batch // min_grid))
    bt = 1
    for d in range(1, min(cap, batch) + 1):
        if batch % d == 0:
            bt = d
    return bt


def cbam_std_attention(x, w1, w2):
    """x: (B, C, H, W); w1: (C//scaling, C); w2: (C, C//scaling). Returns (B, C, 1, 1)."""
    B, C, H, W = x.shape
    HW = H * W
    Cr = w1.shape[0]

    # No dtype upcast here: if x is bf16 we keep it bf16 over HBM (2x less traffic).
    x3 = x.reshape(B, C, HW)
    w1t = jnp.transpose(w1)    # (C, Cr) -- transpose once outside the kernel
    w2t = jnp.transpose(w2)    # (Cr, C)

    per_batch_bytes = C * HW * x3.dtype.itemsize
    Bt = _pick_batch_tile(B, per_batch_bytes)
    # TODO(synk): for extremely large H*W (per-batch tile >~20 MB) add a second
    # "arbitrary" grid axis over HW chunks with running sum/sumsq/max in VMEM scratch.

    block_in_bytes = Bt * per_batch_bytes
    vmem_needed = (2 * block_in_bytes
                   + 2 * Bt * C * x.dtype.itemsize
                   + 2 * (w1t.size * w1t.dtype.itemsize + w2t.size * w2t.dtype.itemsize))
    # >= 32 MiB (raises v5e's 16 MiB scoped default), <= 48 MiB (safe on v7x's 64 MiB VMEM).
    vmem_limit = int(min(max(vmem_needed + (8 << 20), 32 << 20), 48 << 20))

    out = pl.pallas_call(
        cbam_std_attn_kernel,
        out_shape=jax.ShapeDtypeStruct((B, 1, C), x.dtype),
        grid=(B // Bt,),
        in_specs=[
            pl.BlockSpec((Bt, C, HW), lambda b: (b, 0, 0)),
            pl.BlockSpec((C, Cr), lambda b: (0, 0)),
            pl.BlockSpec((Cr, C), lambda b: (0, 0)),
        ],
        out_specs=pl.BlockSpec((Bt, 1, C), lambda b: (b, 0, 0)),
        compiler_params=pltpu.CompilerParams(
            dimension_semantics=("parallel",),
            vmem_limit_bytes=vmem_limit,
        ),
    )(x3, w1t, w2t)
    return out.reshape(B, C, 1, 1)


def cbam_std_attention_ref(x, w1, w2):
    """Pure-JAX reference mirroring the PyTorch forward."""
    B, C, H, W = x.shape
    xf = x.reshape(B, C, -1).astype(jnp.float32)
    avg = jnp.mean(xf, axis=-1)
    mx = jnp.max(xf, axis=-1)
    std = jnp.std(xf, axis=-1, ddof=1)

    def mlp(v):  # v: (B, C)
        h = jnp.maximum(v @ w1.T, 0.0)
        return h @ w2.T

    s = mlp(avg) + mlp(mx) + mlp(std)
    return jax.nn.sigmoid(s).reshape(B, C, 1, 1)


if __name__ == "__main__":
    scaling = 16
    key = jax.random.PRNGKey(0)

    # Case 1: small shapes consistent with the module (scaling=16 => C >= 16).
    B, C, H, W = 2, 32, 16, 16
    Cr = C // scaling
    kx, k1, k2, kx2 = jax.random.split(key, 4)
    x = jax.random.normal(kx, (B, C, H, W), dtype=jnp.float32)
    w1 = jax.random.normal(k1, (Cr, C), dtype=jnp.float32) * (1.0 / jnp.sqrt(C))
    w2 = jax.random.normal(k2, (C, Cr), dtype=jnp.float32) * (1.0 / jnp.sqrt(Cr))

    y = jax.block_until_ready(cbam_std_attention(x, w1, w2))
    y_ref = cbam_std_attention_ref(x, w1, w2)
    assert y.shape == (B, C, 1, 1)
    assert jnp.allclose(y, y_ref, atol=1e-5, rtol=1e-5), "mismatch vs reference (B=2)"

    # Case 2: larger batch to exercise the Bt>1 batched-tile path (Bt=4, grid=2).
    B2 = 8
    x2 = jax.random.normal(kx2, (B2, C, H, W), dtype=jnp.float32)
    y2 = jax.block_until_ready(cbam_std_attention(x2, w1, w2))
    y2_ref = cbam_std_attention_ref(x2, w1, w2)
    assert y2.shape == (B2, C, 1, 1)
    assert jnp.allclose(y2, y2_ref, atol=1e-5, rtol=1e-5), "mismatch vs reference (B=8)"

    print("KERNEL_OK")
</pallas_src>

<mosaic_0001>
module attributes {stable_mosaic.version = 11 : i64} {
  func.func @cbam_std_attn_kernel(%arg0: i32, %arg1: memref<1x32x256xf32, #tpu.memory_space<vmem>>, %arg2: memref<32x2xf32, #tpu.memory_space<vmem>>, %arg3: memref<2x32xf32, #tpu.memory_space<vmem>>, %arg4: memref<1x1x32xf32, #tpu.memory_space<vmem>>) attributes {dimension_semantics = [#tpu.dimension_semantics<parallel>], iteration_bounds = array<i64: 2>, scalar_prefetch = 0 : i64, scratch_operands = 0 : i64, tpu.core_type = #tpu.core_type<tc>, window_params = [{transform_indices = @transform_0, window_bounds = array<i64: 1, 32, 256>}, {pipeline_mode = #tpu.pipeline_mode<synchronous>, transform_indices = @transform_1, window_bounds = array<i64: 32, 2>}, {pipeline_mode = #tpu.pipeline_mode<synchronous>, transform_indices = @transform_2, window_bounds = array<i64: 2, 32>}, {transform_indices = @transform_3, window_bounds = array<i64: 1, 1, 32>}]} {
    %c0 = arith.constant 0 : index
    %c0_0 = arith.constant 0 : index
    %c0_1 = arith.constant 0 : index
    %0 = vector.load %arg1[%c0, %c0_0, %c0_1] : memref<1x32x256xf32, #tpu.memory_space<vmem>>, vector<1x32x256xf32>
    %cst = arith.constant dense<0.000000e+00> : vector<1x32xf32>
    %1 = vector.multi_reduction <add>, %0, %cst [2] : vector<1x32x256xf32> to vector<1x32xf32>
    %2 = arith.mulf %0, %0 : vector<1x32x256xf32>
    %cst_2 = arith.constant dense<0.000000e+00> : vector<1x32xf32>
    %3 = vector.multi_reduction <add>, %2, %cst_2 [2] : vector<1x32x256xf32> to vector<1x32xf32>
    %cst_3 = arith.constant dense<0xFF800000> : vector<1x32xf32>
    %4 = vector.multi_reduction <maximumf>, %0, %cst_3 [2] : vector<1x32x256xf32> to vector<1x32xf32>
    %cst_4 = arith.constant 3.906250e-03 : f32
    %5 = vector.broadcast %cst_4 : f32 to vector<1x32xf32>
    %6 = arith.mulf %1, %5 : vector<1x32xf32>
    %7 = arith.mulf %6, %1 : vector<1x32xf32>
    %8 = arith.subf %3, %7 : vector<1x32xf32>
    %cst_5 = arith.constant 2.550000e+02 : f32
    %9 = vector.broadcast %cst_5 : f32 to vector<1x32xf32>
    %10 = arith.divf %8, %9 : vector<1x32xf32>
    %cst_6 = arith.constant 0.000000e+00 : f32
    %11 = vector.broadcast %cst_6 : f32 to vector<1x32xf32>
    %12 = arith.maximumf %10, %11 : vector<1x32xf32>
    %13 = math.sqrt %12 : vector<1x32xf32>
    %14 = tpu.concatenate %6, %4, %13 in 0 : vector<1x32xf32>, vector<1x32xf32>, vector<1x32xf32> -> vector<3x32xf32>
    %c0_7 = arith.constant 0 : index
    %c0_8 = arith.constant 0 : index
    %15 = vector.load %arg2[%c0_7, %c0_8] : memref<32x2xf32, #tpu.memory_space<vmem>>, vector<32x2xf32>
    %cst_9 = arith.constant dense<0.000000e+00> : vector<3x2xf32>
    %16 = tpu.matmul %14, %15, %cst_9 {dimension_numbers = #tpu.dot_dimension_numbers<[1], [0], [0], [1], [0, 0, 1, 1], [], []>} : vector<3x32xf32>, vector<32x2xf32>, vector<3x2xf32> -> vector<3x2xf32>
    %cst_10 = arith.constant 0.000000e+00 : f32
    %17 = vector.broadcast %cst_10 : f32 to vector<3x2xf32>
    %18 = arith.maximumf %16, %17 : vector<3x2xf32>
    %c0_11 = arith.constant 0 : index
    %c0_12 = arith.constant 0 : index
    %19 = vector.load %arg3[%c0_11, %c0_12] : memref<2x32xf32, #tpu.memory_space<vmem>>, vector<2x32xf32>
    %cst_13 = arith.constant dense<0.000000e+00> : vector<3x32xf32>
    %20 = tpu.matmul %18, %19, %cst_13 {dimension_numbers = #tpu.dot_dimension_numbers<[1], [0], [0], [1], [0, 0, 1, 1], [], []>} : vector<3x2xf32>, vector<2x32xf32>, vector<3x32xf32> -> vector<3x32xf32>
    %21 = vector.extract_strided_slice %20 {offsets = [0, 0], sizes = [1, 32], strides = [1, 1]} : vector<3x32xf32> to vector<1x32xf32>
    %22 = vector.extract_strided_slice %20 {offsets = [1, 0], sizes = [1, 32], strides = [1, 1]} : vector<3x32xf32> to vector<1x32xf32>
    %23 = arith.addf %21, %22 : vector<1x32xf32>
    %24 = vector.extract_strided_slice %20 {offsets = [2, 0], sizes = [1, 32], strides = [1, 1]} : vector<3x32xf32> to vector<1x32xf32>
    %25 = arith.addf %23, %24 : vector<1x32xf32>
    %26 = arith.negf %25 : vector<1x32xf32>
    %27 = math.exp %26 : vector<1x32xf32>
    %cst_14 = arith.constant 1.000000e+00 : f32
    %28 = vector.broadcast %cst_14 : f32 to vector<1x32xf32>
    %29 = arith.addf %28, %27 : vector<1x32xf32>
    %30 = arith.divf %28, %29 : vector<1x32xf32>
    %31 = vector.shape_cast %30 : vector<1x32xf32> to vector<1x1x32xf32>
    %c0_15 = arith.constant 0 : index
    %c0_16 = arith.constant 0 : index
    %c0_17 = arith.constant 0 : index
    %32 = vector.load %arg4[%c0_15, %c0_16, %c0_17] : memref<1x1x32xf32, #tpu.memory_space<vmem>>, vector<1x1x32xf32>
    tpu.vector_store %arg4[%c0_15, %c0_16, %c0_17], %31 {strides = array<i32>} : memref<1x1x32xf32, #tpu.memory_space<vmem>>, vector<1x1x32xf32>,
    return
  }
  func.func @transform_0(%arg0: i32) -> (i32, i32, i32) {
    %c0_i32 = arith.constant 0 : i32
    %c0_i32_0 = arith.constant 0 : i32
    %c0_i32_1 = arith.constant 0 : i32
    return %arg0, %c0_i32, %c0_i32_0 : i32, i32, i32
  }
  func.func @transform_1(%arg0: i32) -> (i32, i32) {
    %c0_i32 = arith.constant 0 : i32
    %c0_i32_0 = arith.constant 0 : i32
    %c0_i32_1 = arith.constant 0 : i32
    return %c0_i32, %c0_i32_0 : i32, i32
  }
  func.func @transform_2(%arg0: i32) -> (i32, i32) {
    %c0_i32 = arith.constant 0 : i32
    %c0_i32_0 = arith.constant 0 : i32
    %c0_i32_1 = arith.constant 0 : i32
    return %c0_i32, %c0_i32_0 : i32, i32
  }
  func.func @transform_3(%arg0: i32) -> (i32, i32, i32) {
    %c0_i32 = arith.constant 0 : i32
    %c0_i32_0 = arith.constant 0 : i32
    %c0_i32_1 = arith.constant 0 : i32
    return %arg0, %c0_i32, %c0_i32_0 : i32, i32, i32
  }
}

</mosaic_0001>

<bundles_post_ra>
// kernel: tpu_custom_call.1
= control target key start
LH: loop header
LB: loop body
LE: loop exit
PB: predicated region body
PF: predicated region fallthrough
CT: control target
= control target key end

     0   :  { %8 = vsyncpa [#allocation3], 0  ;;  %s955_s0 = inlined_call_operand.hbm [shape: f32[2,32,256], index: 0, kind: input, shape index: {}]   ;;  %s956_s1 = inlined_call_operand.vmem [shape: f32[32,2], index: 1, kind: input, shape index: {}]   ;;  %s957_s2 = inlined_call_operand.vmem [shape: f32[2,32], index: 2, kind: input, shape index: {}]   ;;  %s958_s3 = inlined_call_operand.hbm [shape: f32[2,1,32], index: 3, kind: output, shape index: {}]  }
   0x1   :  { %10 = vsyncpa [#allocation3 + $0x1], 0 }
   0x2   :  { %11 = vsyncpa [#allocation4], 0 }
   0x3   :  { %13 = vsyncpa [#allocation4 + $0x1], 0  ;;  %s728_s12 = smov 0   ;;  %s730_s13 = smov 0  }
   0x4   :  { %s732_s14 = smov 0   ;;  %s734_s15 = smov 0  }
   0x5 LB: > { %s749_s16 = sadd.s32 4294967295, %s703_s15   ;;  %s529_s17 = sadd.s32 4294967294, %s703_s15   ;;  %s703_s15 = sphi %s734_s15, %s968_s15   ;;  %s699_s14 = sphi %s732_s14, %s967_s14   ;;  %s695_s13 = sphi %s730_s13, %s966_s13   ;;  %s691_s12 = sphi %s728_s12, %s965_s12  }
   0x6   : > { %s753_s18 = sadd.s32 1, %s703_s15   ;;  %s26_s19 = sadd.s32 1, %s699_s14 }
   0x7   : > { %s23_s20 = ssub.s32 %s703_s15, %s753_s18  ;;  %p33_p0 = scmp.ne.s32.totalorder %s699_s14, %s695_s13 }
   0x8   : > { %p24_p1 = scmp.eq.s32.totalorder %s23_s20, 0  ;;  %p34_p2 = scmp.eq.s32.totalorder %s703_s15, 0 }
   0x9   : > { %p39_p3 = scmp.ne.s32.totalorder %s695_s13, %s691_s12  ;;  %p40_p4 = scmp.eq.s32.totalorder %s749_s16, 0 }
   0xa   : > { %s765_s21 = scalar_select %p24_p1, %s699_s14, %s26_s19  }
   0xb   : > { %p767_p5 = por %p34_p2, %p33_p0  ;;  %p771_p6 = por %p40_p4, %p39_p3 }
   0xc   : > { %p105_p7 = scmp.eq.s32.totalorder %s749_s16, 1  ;;  %p111_p8 = scmp.eq.s32.totalorder %s529_s17, 1 }
   0xd   : > { %p556_p10 = scmp.lt.s32.totalorder %s703_s15, 2  ;;  %s137_s26 = sand.u32 1, %s699_s14  }
   0xe   : > { %p778_p11 = por %p105_p7, %p33_p0  ;;  %p782_p12 = por %p111_p8, %p39_p3 }
   0xf   : > { %s543_s27 = sshll.u32 %s703_s15, 6  ;;  %s532_s28 = sshll.u32 %s137_s26, 6 }
  0x10   : > { %s146_s4 = scalar_lea.hbm %s955_s0, %s543_s27  ;;  %s141_s6 = scalar_lea.vmem [#allocation2], %s532_s28 }
  0x11   : > { %s147_s5 = sshll.u32 %s146_s4, 4  ;;  %s149_s7 = sshll.u32 %s141_s6, 4  ;;  %s148_s5 = int_to_ptr.hbm [resolvable:$true] %s147_s5  ;;  %s150_s7 = int_to_ptr.vmem [resolvable:$true] %s149_s7 }
  0x12   : > { %p793_p13 = pnand %p556_p10, %p767_p5  ;;  %p535_p0 = scmp.ge.s32.totalorder %s703_s15, 1 }
  0x13   : > { %p157_p1 = scmp.lt.s32.totalorder %s703_s15, 3  ;;  %s138_s9 = scalar_lea.sflag [#allocation3], %s137_s26 }
  0x14   : > { %s607_s10 = sshra.s32 %s148_s5, 4  ;;  %p611_p3 = pneg %p793_p13  ;;  %s608_s10 = int_to_ptr.hbm [resolvable:$true] %s607_s10 }
  0x15   : > { %s609_s11 = scalar_lea.hbm %s608_s10, 64  ;;  %s614_s20 = scalar_lea.hbm %s955_s0, 128 }
  0x16   : > { %p610_p2 = scmp.ne.s32.totalorder %s608_s10, %s609_s11  ;;  %p615_p5 = scmp.lt.s32.totalorder %s608_s10, %s955_s0 }
  0x17   : > { %p616_p8 = scmp.lt.s32.totalorder %s614_s20, %s609_s11 }
  0x18   : > { %p612_p4 = pnand %p611_p3, %p610_p2 }
  0x19   : > { %p617_p10 = por %p616_p8, %p615_p5 }
  0x1a   : > { %p613_p7 = pneg %p612_p4 }
  0x1c   : > { %p618_p9 = pnand %p617_p10, %p613_p7 }
  0x1e   : > { %621 = shalt.err (!%p618_p9)
}
  0x1f   : > { %s705_s26 = smov 256   ;;  %s706_s28 = smov 16  }
  0x20   : > { %551 = dma.hbm_to_vmem [thread:$0]  (!%p793_p13), %s148_s5, 1024, %s150_s7, %s138_s9, %s705_s26, %s705_s26, %s706_s28  }
  0x21   : > { %p158_p2 = pnand %p535_p0, %p157_p1 }
  0x22   : > { %s814_s29 = sand.u32 (!%p158_p2), 1, %s695_s13  }
  0x23   : > { %161 = sbr.rel (%p158_p2) target bundleno = 500 (0x1f4), region = 32  ;;  %s536_s30 = sshll.u32 (!%p158_p2), %s814_s29, 6 }
  0x24   : > { %s164_s4 = scalar_lea.sflag (!%p158_p2), [#allocation3], %s814_s29  ;;  %s167_s6 = scalar_lea.vmem (!%p158_p2), [#allocation2], %s536_s30 }
  0x28   : > { %682 = dma.done.wait (%p771_p6), %s164_s4, 1024  }
  0x29   : > { %684 = vsyncadd (%p771_p6), %s164_s4, 4294966272  ;;  %v194_v0 = vld [vmem:[%s167_s6 + $0x20] sm:$0xff]  ;;  %v195_v1 = vld [vmem:[%s167_s6 + $0x28] sm:$0xff]  ;;  %v707_v28 = vmov 255.0   ;;  %vm326_vm1 = vcmask 130112   ;;  %vm330_vm2 = vcmask 195712   ;;  %s459_s26 = scalar_lea.hbm %s958_s3, %s749_s16 }
  0x2a   : > { %v190_v2 = vld [vmem:[%s167_s6] sm:$0xff]  ;;  %v204_v3 = vadd.f32 %v195_v1, %v194_v0  ;;  %v191_v4 = vld [vmem:[%s167_s6 + $0x8] sm:$0xff]  ;;  %v192_v8 = vld [vmem:[%s167_s6 + $0x10] sm:$0xff]  ;;  %v214_v20 = vmul.f32 %v194_v0, %v194_v0  ;;  %v215_v21 = vmul.f32 %v195_v1, %v195_v1  ;;  %v236_v25 = vmax.f32 %v194_v0, %v195_v1  ;;  %s189_s28 = scalar_lea.vmem [#allocation5], %s814_s29  ;;  %s463_s4 = sshll.u32 %s459_s26, 4  ;;  %s464_s4 = int_to_ptr.hbm [resolvable:$true] %s463_s4 }
  0x2b   : > { %v210_v5 = vmul.f32 %v190_v2, %v190_v2  ;;  %v198_v6 = vadd.f32 %v191_v4, %v190_v2  ;;  %v211_v7 = vmul.f32 %v191_v4, %v191_v4  ;;  %v193_v9 = vld [vmem:[%s167_s6 + $0x18] sm:$0xff]  ;;  %v196_v11 = vld [vmem:[%s167_s6 + $0x30] sm:$0xff]  ;;  %v212_v13 = vmul.f32 %v192_v8, %v192_v8  ;;  %v366_v36 = vld [vmem:[%s956_s1 + $0x8] sm:$0xff]  ;;  %s461_s30 = sshll.u32 %s189_s28, 4  ;;  %s451_s16 = scalar_lea.sflag [#allocation4], %s814_s29  ;;  %s462_s30 = int_to_ptr.vmem [resolvable:$true] %s461_s30 }
  0x2c   : > { %205 = vadd.xlane.f32.xlu1 %v204_v3  ;;  %v197_v12 = vld [vmem:[%s167_s6 + $0x38] sm:$0xff]  ;;  %v213_v14 = vmul.f32 %v193_v9, %v193_v9  ;;  %v201_v16 = vadd.f32 %v193_v9, %v192_v8  ;;  %v216_v18 = vmul.f32 %v196_v11, %v196_v11  ;;  %v224_v23 = vadd.f32 %v215_v21, %v214_v20  ;;  %v367_v34 = vld [vmem:[%s956_s1 + $0x10] sm:$0xff]  ;;  %v365_v40 = vld [vmem:[%s956_s1] sm:$0xff]  ;;  %s651_s6 = sshra.s32 %s464_s4, 4  ;;  %s657_s8 = scalar_lea.hbm %s958_s3, 2  ;;  %s652_s6 = int_to_ptr.hbm [resolvable:$true] %s651_s6 }
  0x2d   : > { %199 = vadd.xlane.f32.xlu0 %v198_v6  ;;  %v218_v10 = vadd.f32 %v211_v7, %v210_v5  ;;  %v207_v15 = vadd.f32 %v197_v12, %v196_v11  ;;  %v217_v19 = vmul.f32 %v197_v12, %v197_v12  ;;  %v230_v24 = vmax.f32 %v190_v2, %v191_v4  ;;  %v368_v33 = vld [vmem:[%s956_s1 + $0x18] sm:$0xff]  ;;  %s653_s23 = scalar_lea.hbm %s652_s6, 1  ;;  %p658_p0 = scmp.lt.s32.totalorder %s652_s6, %s958_s3 }
  0x2e   : > { %v221_v17 = vadd.f32 %v213_v14, %v212_v13  ;;  %v233_v26 = vmax.f32 %v192_v8, %v193_v9  ;;  %v239_v27 = vmax.f32 %v196_v11, %v197_v12  ;;  %593 = vrcp.f32 %v707_v28  ;;  %385 = vmatpush.msra.mxu0 %v368_v33  ;;  %p654_p6 = scmp.ne.s32.totalorder %s652_s6, %s653_s23  ;;  %p659_p1 = scmp.lt.s32.totalorder %s657_s8, %s653_s23 }
  0x2f   : > { %219 = vadd.xlane.f32.xlu2 %v218_v10  ;;  %v227_v22 = vadd.f32 %v217_v19, %v216_v18  ;;  %v321_v3 = vlaneseq  ;;  %vm334_vm4 = vcmask 261312   ;;  %vm361_vm12 = vcmask 1040384  }
  0x30   : > { %386 = vmatpush.msra.mxu0 %v367_v34  ;;  %vm363_vm13 = vcmask 1041408   ;;  %vm369_vm14 = vcmask 261120   ;;  %vm395_vm15 = vcmask 15360   ;;  %p655_p9 = pnand %p654_p6, %p778_p11  ;;  %p660_p3 = por %p659_p1, %p658_p0 }
  0x31   : > { %v856_v8 = vand.u32 127, %v321_v3 }
  0x32   : > { %387 = vmatpush.msra.mxu0 %v366_v36  ;;  %p656_p13 = pneg %p655_p9 }
  0x33   : > { %v860_v12 = vadd.s32 4294967288, %v856_v8 }
  0x34   : > { %208 = vadd.xlane.f32.xlu1 %v207_v15  ;;  %v594_v29 = vpop.eup %593  ;;  %388 = vmatpush.msra.mxu0 %v365_v40  ;;  %v863_v15 = vadd.s32 4294967280, %v856_v8  ;;  %p661_p4 = pnand %p660_p3, %p656_p13 }
  0x35   : > { %202 = vadd.xlane.f32.xlu0 %v201_v16  ;;  %v255_v30 = vmul.f32 255.0, %v594_v29  ;;  %vm259_vm0 = vweird.f32 %v594_v29 }
  0x37   : > { %222 = vadd.xlane.f32.xlu2 %v221_v17  ;;  %v256_v31 = vsub.f32 1.0, %v255_v30 }
  0x39   : > { %v257_v32 = vmul.f32 %v594_v29, %v256_v31 }
  0x3b   : > { %v258_v38 = vadd.f32 %v594_v29, %v257_v32 }
  0x3c   : > { %228 = vadd.xlane.f32.xlu1 %v227_v22  ;;  %v868_v22 = vadd.s32 4294967272, %v856_v8 }
  0x3d   : > { %225 = vadd.xlane.f32.xlu0 %v224_v23  ;;  %v260_v43 = vsel %vm259_vm0, %v594_v29, %v258_v38 }
  0x3f   : > { %231 = vmax.xlane.f32.xlu2 %v230_v24 }
  0x44   : > { %237 = vmax.xlane.f32.xlu1 %v236_v25 }
  0x45   : > { %234 = vmax.xlane.f32.xlu0 %v233_v26 }
  0x47   : > { %240 = vmax.xlane.f32.xlu2 %v239_v27 }
  0x9f   : > { %v206_v35 = vpop.xlane.xlu1 %205 }
  0xa0   : > { %v200_v37 = vpop.xlane.xlu0 %199  ;;  %v841_v51 = vmul.f32 0.00390625, %v206_v35 }
  0xa1   : > { %v831_v39 = vmul.f32 0.00390625, %v200_v37 }
  0xa2   : > { %v220_v41 = vpop.xlane.xlu2 %219  ;;  %v248_v56 = vmul.f32 %v841_v51, %v206_v35  ;;  %v329_v26 = vperm.slane %v841_v51, %v863_v15 }
  0xa3   : > { %v246_v42 = vmul.f32 %v831_v39, %v200_v37  ;;  %v323_v29 = vperm.slane %v831_v39, %v856_v8 }
  0xa5   : > { %v250_v44 = vsub.f32 %v220_v41, %v246_v42 }
  0xa7   : > { %v261_v45 = vmul.f32 %v260_v43, %v250_v44  ;;  %v209_v46 = vpop.xlane.xlu1 %208 }
  0xa8   : > { %v203_v47 = vpop.xlane.xlu0 %202  ;;  %v839_v50 = vmul.f32 0.00390625, %v209_v46 }
  0xa9   : > { %v837_v48 = vmax.f32 %v261_v45, 0.0  ;;  %v243_v49 = vmul.f32 0.00390625, %v203_v47 }
  0xaa   : > { %v223_v53 = vpop.xlane.xlu2 %222  ;;  %v249_v55 = vmul.f32 %v839_v50, %v209_v46 }
  0xab   : > { %595 = vrsqrt.f32 %v837_v48  ;;  %v247_v52 = vmul.f32 %v243_v49, %v203_v47  ;;  %v325_v23 = vperm.slane %v243_v49, %v860_v12  ;;  %vm276_vm3 = vcmp.eq.f32.partialorder %v837_v48, inf }
  0xac   : > { %vm278_vm5 = vcmp.eq.f32.partialorder %v837_v48, 0.0  ;;  %v279_v38 = vand.u32 2147483648, %v837_v48 }
  0xad   : > { %v251_v54 = vsub.f32 %v223_v53, %v247_v52  ;;  %v327_v37 = vsel %vm326_vm1, %v325_v23, %v323_v29 }
  0xaf   : > { %v262_v57 = vmul.f32 %v260_v43, %v251_v54  ;;  %v229_v58 = vpop.xlane.xlu1 %228 }
  0xb0   : > { %v253_v59 = vsub.f32 %v229_v58, %v249_v55  ;;  %v226_v60 = vpop.xlane.xlu0 %225 }
  0xb1   : > { %v596_v61 = vpop.eup %595  ;;  %v846_v62 = vmax.f32 %v262_v57, 0.0  ;;  %v252_v63 = vsub.f32 %v226_v60, %v248_v56 }
  0xb2   : > { %v270_v0 = vmul.f32 %v596_v61, %v837_v48  ;;  %v264_v1 = vmul.f32 %v260_v43, %v253_v59  ;;  %v232_v13 = vpop.xlane.xlu2 %231 }
  0xb3   : > { %597 = vrsqrt.f32 %v846_v62  ;;  %v263_v2 = vmul.f32 %v260_v43, %v252_v63  ;;  %v341_v32 = vperm.slane %v232_v13, %v856_v8  ;;  %vm288_vm6 = vcmp.eq.f32.partialorder %v846_v62, inf }
  0xb4   : > { %v850_v4 = vmax.f32 %v264_v1, 0.0  ;;  %v271_v5 = vmul.f32 %v596_v61, %v270_v0  ;;  %vm290_vm7 = vcmp.eq.f32.partialorder %v846_v62, 0.0  ;;  %v291_v45 = vand.u32 2147483648, %v846_v62 }
  0xb5   : > { %v852_v6 = vmax.f32 %v263_v2, 0.0  ;;  %v331_v1 = vsel %vm330_vm2, %v329_v26, %v327_v37 }
  0xb6   : > { %599 = vrsqrt.f32 %v850_v4  ;;  %v272_v7 = vmul.f32 0.5, %v271_v5  ;;  %vm312_vm8 = vcmp.eq.f32.partialorder %v850_v4, inf  ;;  %vm314_vm10 = vcmp.eq.f32.partialorder %v850_v4, 0.0 }
  0xb7   : > { %601 = vrsqrt.f32 %v852_v6  ;;  %v238_v34 = vpop.xlane.xlu1 %237  ;;  %vm300_vm9 = vcmp.eq.f32.partialorder %v852_v6, inf  ;;  %v315_v57 = vand.u32 2147483648, %v850_v4  ;;  %v303_v59 = vand.u32 2147483648, %v852_v6 }
  0xb8   : > { %v273_v10 = vsub.f32 1.5, %v272_v7  ;;  %v235_v24 = vpop.xlane.xlu0 %234  ;;  %v344_v42 = vperm.slane %v238_v34, %v863_v15  ;;  %vm302_vm11 = vcmp.eq.f32.partialorder %v852_v6, 0.0 }
  0xb9   : > { %v598_v9 = vpop.eup %597  ;;  %v342_v33 = vperm.slane %v235_v24, %v860_v12 }
  0xba   : > { %v282_v11 = vmul.f32 %v598_v9, %v846_v62  ;;  %v274_v18 = vmul.f32 %v596_v61, %v273_v10  ;;  %v241_v43 = vpop.xlane.xlu2 %240 }
  0xbb   : > { %v343_v47 = vsel %vm326_vm1, %v342_v33, %v341_v32  ;;  %v346_v54 = vperm.slane %v241_v43, %v868_v22 }
  0xbc   : > { %v600_v14 = vpop.eup %599  ;;  %v283_v16 = vmul.f32 %v598_v9, %v282_v11  ;;  %v275_v30 = vmul.f32 %v274_v18, %v837_v48  ;;  %v345_v58 = vsel %vm330_vm2, %v344_v42, %v343_v47 }
  0xbd   : > { %v602_v17 = vpop.eup %601  ;;  %v306_v19 = vmul.f32 %v600_v14, %v850_v4  ;;  %v347_v5 = vsel %vm334_vm4, %v346_v54, %v345_v58 }
  0xbe   : > { %v284_v20 = vmul.f32 0.5, %v283_v16  ;;  %v294_v21 = vmul.f32 %v602_v17, %v852_v6  ;;  %v277_v44 = vsel %vm276_vm3, %v837_v48, %v275_v30  ;;  %vm448_vm3 = vcmask 253952  }
  0xbf   : > { %v307_v25 = vmul.f32 %v600_v14, %v306_v19  ;;  %v280_v55 = vsel %vm278_vm5, %v279_v38, %v277_v44 }
  0xc0   : > { %v285_v27 = vsub.f32 1.5, %v284_v20  ;;  %v295_v28 = vmul.f32 %v602_v17, %v294_v21  ;;  %v353_v2 = vperm.slane %v280_v55, %v856_v8  ;;  %v394_v8 = vld [vmem:[%s957_s2] sm:$0x3] }
  0xc1   : > { %v308_v31 = vmul.f32 0.5, %v307_v25  ;;  %538 = vmatpush.msk.msra.mxu1 %vm363_vm13, %v394_v8 }
  0xc2   : > { %v286_v35 = vmul.f32 %v598_v9, %v285_v27  ;;  %v296_v36 = vmul.f32 0.5, %v295_v28 }
  0xc3   : > { %v309_v39 = vsub.f32 1.5, %v308_v31 }
  0xc4   : > { %v287_v40 = vmul.f32 %v286_v35, %v846_v62  ;;  %v297_v41 = vsub.f32 1.5, %v296_v36 }
  0xc5   : > { %v310_v46 = vmul.f32 %v600_v14, %v309_v39 }
  0xc6   : > { %v289_v49 = vsel %vm288_vm6, %v846_v62, %v287_v40  ;;  %v298_v51 = vmul.f32 %v602_v17, %v297_v41  ;;  %v333_v62 = vperm.slane %v839_v50, %v868_v22 }
  0xc7   : > { %v292_v52 = vsel %vm290_vm7, %v291_v45, %v289_v49  ;;  %v311_v53 = vmul.f32 %v310_v46, %v850_v4 }
  0xc8   : > { %v299_v56 = vmul.f32 %v298_v51, %v852_v6  ;;  %v354_v61 = vperm.slane %v292_v52, %v860_v12  ;;  %v335_v50 = vsel %vm334_vm4, %v333_v62, %v331_v1 }
  0xc9   : > { %v313_v60 = vsel %vm312_vm8, %v850_v4, %v311_v53  ;;  %v362_v10 = vsel %vm361_vm12, %v335_v50, %v347_v5 }
  0xca   : > { %v301_v63 = vsel %vm300_vm9, %v852_v6, %v299_v56  ;;  %v316_v48 = vsel %vm314_vm10, %v315_v57, %v313_v60  ;;  %v355_v7 = vsel %vm326_vm1, %v354_v61, %v353_v2 }
  0xcb   : > { %v304_v0 = vsel %vm302_vm11, %v303_v59, %v301_v63  ;;  %v358_v3 = vperm.slane %v316_v48, %v868_v22 }
  0xcc   : > { %v356_v4 = vperm.slane %v304_v0, %v863_v15 }
  0xce   : > { %v357_v6 = vsel %vm330_vm2, %v356_v4, %v355_v7 }
  0xcf   : > { %v359_v9 = vsel %vm334_vm4, %v358_v3, %v357_v6 }
  0xd0   : > { %v364_v11 = vsel %vm363_vm13, %v362_v10, %v359_v9 }
  0xd1   : > { %537 = vmatmul.msk.f32.vlgmr.msra.gmra.mxu0 %vm369_vm14, %v364_v11 }
 0x14e   : > { %v390_v12 = vpop.f32.mrf.mxu0 }
 0x14f   : > { %v393_v13 = vmax.f32 %v390_v12, 0.0 }
 0x151   : > { %539 = vmatmul.msk.f32.vlgmr.msra.gmra.mxu1 %vm395_vm15, %v393_v13 }
 0x1ce   : > { %v419_v14 = vpop.f32.mrf.mxu1 }
 0x1cf   : > { %v423_v15 = vrot.slane %v419_v14, 1  ;;  %v426_v17 = vrot.slane %v419_v14, 2 }
 0x1d1   : > { %v425_v16 = vadd.f32 %v423_v15, %v419_v14 }
 0x1d3   : > { %v428_v18 = vadd.f32 %v426_v17, %v425_v16 }
 0x1d5   : > { %v540_v19 = vmul.f32 -1.442695, %v428_v18 }
 0x1d7   : > { %603 = vpow2.f32 %v540_v19 }
 0x1dd   : > { %v604_v20 = vpop.eup %603 }
 0x1de   : > { %v432_v21 = vadd.f32 1.0, %v604_v20 }
 0x1e0   : > { %605 = vrcp.f32 %v432_v21  ;;  %v444_v25 = vand.u32 2147483648, %v432_v21  ;;  %v442_v27 = vand.u32 2147483647, %v432_v21  ;;  %vm438_vm1 = vweird.f32 %v432_v21 }
 0x1e2   : > { %v445_v29 = vor.u32 1.1754944e-38, %v444_v25  ;;  %vm443_vm4 = vcmp.eq.f32.partialorder %v442_v27, 8.507059e+37 }
 0x1e6   : > { %v606_v22 = vpop.eup %605 }
 0x1e7   : > { %v434_v23 = vmul.f32 %v606_v22, %v432_v21  ;;  %vm439_vm0 = vweird.f32 %v606_v22 }
 0x1e8   : > { %vm440_vm2 = vmor %vm438_vm1, %vm439_vm0 }
 0x1e9   : > { %v435_v24 = vsub.f32 1.0, %v434_v23 }
 0x1eb   : > { %v436_v26 = vmul.f32 %v606_v22, %v435_v24 }
 0x1ed   : > { %v437_v28 = vadd.f32 %v606_v22, %v436_v26 }
 0x1ef   : > { %v441_v30 = vsel %vm440_vm2, %v606_v22, %v437_v28 }
 0x1f0   : > { %v446_v31 = vsel %vm443_vm4, %v445_v29, %v441_v30 }
 0x1f1   : > { %449 = vst.msk [vmem:[%s189_s28] sm:$0x1] %vm448_vm3, %v446_v31 }
 0x1f2   : > { %664 = shalt.err (!%p661_p4)
}
 0x1f3   : > { %546 = dma.vmem_to_hbm [thread:$0]  (%p778_p11), %s462_s30, 16, %s464_s4, %s451_s16  }
 0x1f4 PF: > { %s475_s29 = sand.u32 1, %s691_s12   ;;  %p964_p7 = scmp.ge.s32.totalorder %s703_s15, 2 }
 0x1f5   : > { %s476_s11 = scalar_lea.sflag [#allocation4], %s475_s29 }
 0x1f6   : > { %p553_p5 = pnand %p964_p7, %p782_p12 }
 0x1f8   : > { %p554_p8 = pneg %p553_p5 }
 0x1fa   : > { %686 = dma.done.wait (%p554_p8), %s476_s11, 16  }
 0x1fb   : > { %688 = vsyncadd (%p554_p8), %s476_s11, 4294967280  ;;  %p16_p10 = scmp.ge.s32.totalorder %s753_s18, 4   ;;  %s965_s12 = smov %s695_s13 }
 0x1fc   : > { %s966_s13 = smov %s699_s14  ;;  %s967_s14 = smov %s765_s21 }
 0x1fd   : > { %s968_s15 = smov %s753_s18  ;;  %18 = sbr.rel (!%p16_p10) target bundleno = 5 (0x5), region = 77 }
 0x202   :  { %481 = vsyncpa [#allocation3], 1 }
 0x203   :  { %483 = vsyncpa [#allocation3 + $0x1], 1 }
 0x204   :  { %484 = vsyncpa [#allocation4], 1 }
 0x205   :  { %486 = vsyncpa [#allocation4 + $0x1], 1 }

</bundles_post_ra>
